<compile_context>
chip_gen: v5e
topology: v5e:2x2
jax: 0.10.0
libtpu: 0.0.40
codegen_flags: <defaults>
</compile_context>

<pallas_src>
import math
import functools

import jax
import jax.numpy as jnp
import numpy as np
from jax import lax
from jax.experimental import pallas as pl
from jax.experimental.pallas import tpu as pltpu


# ----------------------------------------------------------------------------
# Pallas kernel: CrossAttentionNoGate forward for one (batch, q-tile) block.
# ----------------------------------------------------------------------------
def _cross_attn_kernel(xq_ref, xkv_ref, am_ref, bias_ref,
                       wq_ref, wk_ref, wv_ref, wo_ref, bo_ref,
                       out_ref, *, num_heads, c_hidden):
    H, D = num_heads, c_hidden

    xq = xq_ref[0]          # [TQ, c_q]   bf16
    xkv = xkv_ref[0]        # [KV, c_kv]  bf16
    am = am_ref[0]          # [Hm, Qm, KV] f32, already (mask - 1) * inf
    bias = bias_ref[0]      # [Hb, Qb, KV] f32
    Hm = am.shape[0]
    Hb = bias.shape[0]

    scale = 1.0 / math.sqrt(D)

    # Fused full-width projections on the MXU (bf16 operands, f32 accumulate).
    q = jnp.dot(xq, wq_ref[...], preferred_element_type=jnp.float32) * scale
    k = jnp.dot(xkv, wk_ref[...], preferred_element_type=jnp.float32)
    v = jnp.dot(xkv, wv_ref[...], preferred_element_type=jnp.float32)
    q = q.astype(jnp.bfloat16)      # [TQ, H*D]
    k = k.astype(jnp.bfloat16)      # [KV, H*D]
    v = v.astype(jnp.bfloat16)      # [KV, H*D]

    wo = wo_ref[...]                # [H*D, c_q] bf16
    acc = jnp.zeros((xq.shape[0], wo.shape[1]), jnp.float32)   # [TQ, c_q]

    for h in range(H):              # static unroll over heads
        lo, hi = h * D, (h + 1) * D
        # logits[q, kv] = sum_d q[q, d] * k[kv, d]
        logits = lax.dot_general(
            q[:, lo:hi], k[:, lo:hi],
            dimension_numbers=(((1,), (1,)), ((), ())),
            preferred_element_type=jnp.float32)                # [TQ, KV]
        # Additive mask / bias broadcast over heads and/or queries as needed.
        logits = logits + am[min(h, Hm - 1)] + bias[min(h, Hb - 1)]

        # Numerically stable softmax over KV (f32, reciprocal on the EUP).
        m = jnp.max(logits, axis=-1, keepdims=True)
        p = jnp.exp(logits - m)
        denom = jnp.sum(p, axis=-1, keepdims=True)
        p = p * pl.reciprocal(denom, approx=True)

        ctx = jnp.dot(p.astype(jnp.bfloat16), v[:, lo:hi],
                      preferred_element_type=jnp.float32)      # [TQ, D]
        # Per-head output projection accumulation (== concat + full matmul).
        acc = acc + jnp.dot(ctx.astype(jnp.bfloat16), wo[lo:hi, :],
                            preferred_element_type=jnp.float32)

    out_ref[0] = acc + bo_ref[...]                             # [TQ, c_q] f32


# ----------------------------------------------------------------------------
# Wrapper: grid / BlockSpec setup.
# ----------------------------------------------------------------------------
def cross_attention_no_gate(input_q, input_kv, mask, bias, params,
                            *, num_heads, c_hidden, inf, q_tile=None):
    B, Q, c_q = input_q.shape
    _, KV, c_kv = input_kv.shape
    H, D = num_heads, c_hidden
    HD = H * D

    # Q tiling: gives a second parallel grid axis and bounds VMEM per block.
    if q_tile is None:
        q_tile = 128 if (Q % 128 == 0) else Q
    assert Q % q_tile == 0
    n_qt = Q // q_tile

    # Additive mask, precomputed once, kept in its natural broadcast shape.
    if mask.ndim < 4:
        mask = mask.reshape((1,) * (4 - mask.ndim) + mask.shape)
    add_mask = (mask.astype(jnp.float32) - 1.0) * inf
    add_mask = jnp.broadcast_to(add_mask, (B,) + add_mask.shape[-3:])
    Hm, Qm = add_mask.shape[1], add_mask.shape[2]

    if bias is None:
        bias = jnp.zeros((1, 1, 1, KV), jnp.float32)
    if bias.ndim < 4:
        bias = bias.reshape((1,) * (4 - bias.ndim) + bias.shape)
    bias = jnp.broadcast_to(bias.astype(jnp.float32), (B,) + bias.shape[-3:])
    Hb, Qb = bias.shape[1], bias.shape[2]

    Qm_blk = q_tile if Qm == Q else Qm
    Qb_blk = q_tile if Qb == Q else Qb
    if Qm == Q:
        mask_map = lambda b, qi: (b, 0, qi, 0)
    else:
        mask_map = lambda b, qi: (b, 0, 0, 0)
    if Qb == Q:
        bias_map = lambda b, qi: (b, 0, qi, 0)
    else:
        bias_map = lambda b, qi: (b, 0, 0, 0)

    # bf16 operands for the MXU; accumulation stays f32 in the kernel.
    xq_bf = input_q.astype(jnp.bfloat16)
    xkv_bf = input_kv.astype(jnp.bfloat16)
    wq = params["wq"].astype(jnp.bfloat16)
    wk = params["wk"].astype(jnp.bfloat16)
    wv = params["wv"].astype(jnp.bfloat16)
    wo = params["wo"].astype(jnp.bfloat16)
    bo = params["bo"].astype(jnp.float32)

    kernel = functools.partial(_cross_attn_kernel,
                               num_heads=H, c_hidden=D)

    grid_spec = pltpu.PrefetchScalarGridSpec(
        num_scalar_prefetch=0,
        grid=(B, n_qt),
        in_specs=[
            pl.BlockSpec((1, q_tile, c_q), lambda b, qi: (b, qi, 0)),   # x_q
            pl.BlockSpec((1, KV, c_kv), lambda b, qi: (b, 0, 0)),       # x_kv
            pl.BlockSpec((1, Hm, Qm_blk, KV), mask_map),                # add mask
            pl.BlockSpec((1, Hb, Qb_blk, KV), bias_map),                # bias
            pl.BlockSpec((c_q, HD), lambda b, qi: (0, 0)),              # Wq
            pl.BlockSpec((c_kv, HD), lambda b, qi: (0, 0)),             # Wk
            pl.BlockSpec((c_kv, HD), lambda b, qi: (0, 0)),             # Wv
            pl.BlockSpec((HD, c_q), lambda b, qi: (0, 0)),              # Wo
            pl.BlockSpec((1, c_q), lambda b, qi: (0, 0)),               # bo
        ],
        out_specs=pl.BlockSpec((1, q_tile, c_q), lambda b, qi: (b, qi, 0)),
    )

    return pl.pallas_call(
        kernel,
        out_shape=jax.ShapeDtypeStruct((B, Q, c_q), jnp.float32),
        grid_spec=grid_spec,
        compiler_params=pltpu.CompilerParams(
            dimension_semantics=("parallel", "parallel"),
            vmem_limit_bytes=48 * 1024 * 1024),
    )(xq_bf, xkv_bf, add_mask, bias, wq, wk, wv, wo, bo)


# ----------------------------------------------------------------------------
# Pure-JAX reference (mirrors the PyTorch forward exactly, f32).
# ----------------------------------------------------------------------------
def reference_forward(input_q, input_kv, mask, bias, params,
                      *, num_heads, c_hidden, inf):
    B, Q, c_q = input_q.shape
    _, KV, _ = input_kv.shape
    H, D = num_heads, c_hidden

    q = input_q @ params["wq"]               # [B, Q, H*D]
    k = input_kv @ params["wk"]              # [B, KV, H*D]
    v = input_kv @ params["wv"]              # [B, KV, H*D]

    q = q.reshape(B, Q, H, D).transpose(0, 2, 1, 3)   # [B, H, Q, D]
    k = k.reshape(B, KV, H, D).transpose(0, 2, 1, 3)  # [B, H, KV, D]
    v = v.reshape(B, KV, H, D).transpose(0, 2, 1, 3)  # [B, H, KV, D]
    q = q / math.sqrt(D)

    a = jnp.einsum("bhqd,bhkd->bhqk", q, k)
    a = a + (jnp.broadcast_to(mask, (B, H, Q, KV)) - 1.0) * inf
    a = a + jnp.broadcast_to(bias, (B, H, Q, KV))
    a = jax.nn.softmax(a, axis=-1)
    o = jnp.einsum("bhqk,bhkd->bhqd", a, v)            # [B, H, Q, D]
    o = o.transpose(0, 2, 1, 3).reshape(B, Q, H * D)   # [B, Q, H*D]
    return o @ params["wo"] + params["bo"]


# ----------------------------------------------------------------------------
# Deterministic parameter init (shapes from CrossAttentionNoGate.__init__).
# ----------------------------------------------------------------------------
def init_params(key, c_q, c_kv, c_hidden, num_heads):
    hd = c_hidden * num_heads

    def glorot(k, fan_in, fan_out):
        lim = math.sqrt(6.0 / (fan_in + fan_out))
        return jax.random.uniform(k, (fan_in, fan_out), jnp.float32, -lim, lim)

    k1, k2, k3, k4, k5 = jax.random.split(key, 5)
    # torch Linear applies x @ W.T; weights stored pre-transposed here.
    return {
        "wq": glorot(k1, c_q, hd),
        "wk": glorot(k2, c_kv, hd),
        "wv": glorot(k3, c_kv, hd),
        # linear_o uses init='final' (zeros) in OpenFold; nonzero here so the
        # test exercises the output projection.
        "wo": glorot(k4, hd, c_q),
        "bo": 0.01 * jax.random.normal(k5, (1, c_q), jnp.float32),
    }


if __name__ == "__main__":
    # Small synthetic shapes consistent with the module's forward.
    B, Q, KV = 2, 16, 32
    c_q, c_kv, c_hidden, num_heads = 32, 24, 16, 4
    inf = 1e9
    # chunk_size=None path; the chunked path is semantically identical
    # (Q tiling in the grid plays the same memory-bounding role).

    key = jax.random.PRNGKey(0)
    k_q, k_kv, k_m, k_b, k_p = jax.random.split(key, 5)

    input_q = jax.random.normal(k_q, (B, Q, c_q), jnp.float32)
    input_kv = jax.random.normal(k_kv, (B, KV, c_kv), jnp.float32)

    # mask broadcastable to [B, H, Q, KV]; typical OpenFold shape [B, 1, 1, KV]
    mask = (jax.random.uniform(k_m, (B, 1, 1, KV)) > 0.3).astype(jnp.float32)
    mask = mask.at[..., 0].set(1.0)  # avoid fully-masked rows
    bias = 0.1 * jax.random.normal(k_b, (B, num_heads, Q, KV), jnp.float32)

    params = init_params(k_p, c_q, c_kv, c_hidden, num_heads)

    out = cross_attention_no_gate(
        input_q, input_kv, mask, bias, params,
        num_heads=num_heads, c_hidden=c_hidden, inf=inf)
    out = jax.block_until_ready(out)

    ref = reference_forward(
        input_q, input_kv, mask, bias, params,
        num_heads=num_heads, c_hidden=c_hidden, inf=inf)
    ref = jax.block_until_ready(ref)

    # bf16 matmul operands vs. f32 reference -> relaxed tolerance.
    np.testing.assert_allclose(np.asarray(out), np.asarray(ref),
                               rtol=2e-2, atol=5e-2)
    print("KERNEL_OK")
</pallas_src>

<mosaic_0001>
module attributes {stable_mosaic.version = 11 : i64} {
  func.func @_cross_attn_kernel(%arg0: i32, %arg1: i32, %arg2: memref<1x16x32xbf16, #tpu.memory_space<vmem>>, %arg3: memref<1x32x24xbf16, #tpu.memory_space<vmem>>, %arg4: memref<1x1x1x32xf32, #tpu.memory_space<vmem>>, %arg5: memref<1x4x16x32xf32, #tpu.memory_space<vmem>>, %arg6: memref<32x64xbf16, #tpu.memory_space<vmem>>, %arg7: memref<24x64xbf16, #tpu.memory_space<vmem>>, %arg8: memref<24x64xbf16, #tpu.memory_space<vmem>>, %arg9: memref<64x32xbf16, #tpu.memory_space<vmem>>, %arg10: memref<1x32xf32, #tpu.memory_space<vmem>>, %arg11: memref<1x16x32xf32, #tpu.memory_space<vmem>>) attributes {dimension_semantics = [#tpu.dimension_semantics<parallel>, #tpu.dimension_semantics<parallel>], iteration_bounds = array<i64: 2, 1>, scalar_prefetch = 0 : i64, scratch_operands = 0 : i64, tpu.core_type = #tpu.core_type<tc>, window_params = [{transform_indices = @transform_0, window_bounds = array<i64: 1, 16, 32>}, {transform_indices = @transform_1, window_bounds = array<i64: 1, 32, 24>}, {transform_indices = @transform_2, window_bounds = array<i64: 1, 1, 1, 32>}, {transform_indices = @transform_3, window_bounds = array<i64: 1, 4, 16, 32>}, {pipeline_mode = #tpu.pipeline_mode<synchronous>, transform_indices = @transform_4, window_bounds = array<i64: 32, 64>}, {pipeline_mode = #tpu.pipeline_mode<synchronous>, transform_indices = @transform_5, window_bounds = array<i64: 24, 64>}, {pipeline_mode = #tpu.pipeline_mode<synchronous>, transform_indices = @transform_6, window_bounds = array<i64: 24, 64>}, {pipeline_mode = #tpu.pipeline_mode<synchronous>, transform_indices = @transform_7, window_bounds = array<i64: 64, 32>}, {pipeline_mode = #tpu.pipeline_mode<synchronous>, transform_indices = @transform_8, window_bounds = array<i64: 1, 32>}, {transform_indices = @transform_9, window_bounds = array<i64: 1, 16, 32>}]} {
    %c0 = arith.constant 0 : index
    %c0_0 = arith.constant 0 : index
    %c0_1 = arith.constant 0 : index
    %0 = vector.load %arg2[%c0, %c0_0, %c0_1] : memref<1x16x32xbf16, #tpu.memory_space<vmem>>, vector<1x16x32xbf16>
    %1 = vector.shape_cast %0 : vector<1x16x32xbf16> to vector<16x32xbf16>
    %c0_2 = arith.constant 0 : index
    %c0_3 = arith.constant 0 : index
    %c0_4 = arith.constant 0 : index
    %2 = vector.load %arg3[%c0_2, %c0_3, %c0_4] : memref<1x32x24xbf16, #tpu.memory_space<vmem>>, vector<1x32x24xbf16>
    %3 = vector.shape_cast %2 : vector<1x32x24xbf16> to vector<32x24xbf16>
    %c0_5 = arith.constant 0 : index
    %c0_6 = arith.constant 0 : index
    %c0_7 = arith.constant 0 : index
    %c0_8 = arith.constant 0 : index
    %4 = vector.load %arg4[%c0_5, %c0_6, %c0_7, %c0_8] : memref<1x1x1x32xf32, #tpu.memory_space<vmem>>, vector<1x1x1x32xf32>
    %5 = vector.shape_cast %4 : vector<1x1x1x32xf32> to vector<1x1x32xf32>
    %c0_9 = arith.constant 0 : index
    %c0_10 = arith.constant 0 : index
    %c0_11 = arith.constant 0 : index
    %c0_12 = arith.constant 0 : index
    %6 = vector.load %arg5[%c0_9, %c0_10, %c0_11, %c0_12] : memref<1x4x16x32xf32, #tpu.memory_space<vmem>>, vector<1x4x16x32xf32>
    %7 = vector.shape_cast %6 : vector<1x4x16x32xf32> to vector<4x16x32xf32>
    %c0_13 = arith.constant 0 : index
    %c0_14 = arith.constant 0 : index
    %8 = vector.load %arg6[%c0_13, %c0_14] : memref<32x64xbf16, #tpu.memory_space<vmem>>, vector<32x64xbf16>
    %cst = arith.constant dense<0.000000e+00> : vector<16x64xf32>
    %9 = tpu.matmul %1, %8, %cst {dimension_numbers = #tpu.dot_dimension_numbers<[1], [0], [0], [1], [0, 0, 1, 1], [], []>} : vector<16x32xbf16>, vector<32x64xbf16>, vector<16x64xf32> -> vector<16x64xf32>
    %cst_15 = arith.constant 2.500000e-01 : f32
    %10 = vector.broadcast %cst_15 : f32 to vector<16x64xf32>
    %11 = arith.mulf %9, %10 : vector<16x64xf32>
    %c0_16 = arith.constant 0 : index
    %c0_17 = arith.constant 0 : index
    %12 = vector.load %arg7[%c0_16, %c0_17] : memref<24x64xbf16, #tpu.memory_space<vmem>>, vector<24x64xbf16>
    %cst_18 = arith.constant dense<0.000000e+00> : vector<32x64xf32>
    %13 = tpu.matmul %3, %12, %cst_18 {dimension_numbers = #tpu.dot_dimension_numbers<[1], [0], [0], [1], [0, 0, 1, 1], [], []>} : vector<32x24xbf16>, vector<24x64xbf16>, vector<32x64xf32> -> vector<32x64xf32>
    %c0_19 = arith.constant 0 : index
    %c0_20 = arith.constant 0 : index
    %14 = vector.load %arg8[%c0_19, %c0_20] : memref<24x64xbf16, #tpu.memory_space<vmem>>, vector<24x64xbf16>
    %cst_21 = arith.constant dense<0.000000e+00> : vector<32x64xf32>
    %15 = tpu.matmul %3, %14, %cst_21 {dimension_numbers = #tpu.dot_dimension_numbers<[1], [0], [0], [1], [0, 0, 1, 1], [], []>} : vector<32x24xbf16>, vector<24x64xbf16>, vector<32x64xf32> -> vector<32x64xf32>
    %16 = arith.truncf %11 : vector<16x64xf32> to vector<16x64xbf16>
    %17 = arith.truncf %13 : vector<32x64xf32> to vector<32x64xbf16>
    %18 = arith.truncf %15 : vector<32x64xf32> to vector<32x64xbf16>
    %c0_22 = arith.constant 0 : index
    %c0_23 = arith.constant 0 : index
    %19 = vector.load %arg9[%c0_22, %c0_23] : memref<64x32xbf16, #tpu.memory_space<vmem>>, vector<64x32xbf16>
    %cst_24 = arith.constant 0.000000e+00 : f32
    %20 = vector.broadcast %cst_24 : f32 to vector<16x32xf32>
    %21 = vector.extract_strided_slice %16 {offsets = [0, 0], sizes = [16, 16], strides = [1, 1]} : vector<16x64xbf16> to vector<16x16xbf16>
    %22 = vector.extract_strided_slice %17 {offsets = [0, 0], sizes = [32, 16], strides = [1, 1]} : vector<32x64xbf16> to vector<32x16xbf16>
    %cst_25 = arith.constant dense<0.000000e+00> : vector<16x32xf32>
    %23 = tpu.matmul %21, %22, %cst_25 {dimension_numbers = #tpu.dot_dimension_numbers<[1], [1], [0], [0], [0, 0, 1, 0], [], []>} : vector<16x16xbf16>, vector<32x16xbf16>, vector<16x32xf32> -> vector<16x32xf32>
    %24 = vector.shape_cast %5 : vector<1x1x32xf32> to vector<1x32xf32>
    %25 = vector.broadcast %24 : vector<1x32xf32> to vector<16x32xf32>
    %26 = arith.addf %23, %25 : vector<16x32xf32>
    %27 = vector.extract_strided_slice %7 {offsets = [0, 0, 0], sizes = [1, 16, 32], strides = [1, 1, 1]} : vector<4x16x32xf32> to vector<1x16x32xf32>
    %28 = vector.shape_cast %27 : vector<1x16x32xf32> to vector<16x32xf32>
    %29 = arith.addf %26, %28 : vector<16x32xf32>
    %cst_26 = arith.constant dense<0xFF800000> : vector<16xf32>
    %30 = vector.multi_reduction <maximumf>, %29, %cst_26 [1] : vector<16x32xf32> to vector<16xf32>
    %31 = vector.shape_cast %30 : vector<16xf32> to vector<16x1xf32>
    %32 = vector.broadcast %31 : vector<16x1xf32> to vector<16x32xf32>
    %33 = arith.subf %29, %32 : vector<16x32xf32>
    %34 = math.exp %33 : vector<16x32xf32>
    %cst_27 = arith.constant dense<0.000000e+00> : vector<16xf32>
    %35 = vector.multi_reduction <add>, %34, %cst_27 [1] : vector<16x32xf32> to vector<16xf32>
    %36 = vector.shape_cast %35 : vector<16xf32> to vector<16x1xf32>
    %37 = tpu.reciprocal %36 {approx = true} : vector<16x1xf32> -> vector<16x1xf32>
    %38 = vector.broadcast %37 : vector<16x1xf32> to vector<16x32xf32>
    %39 = arith.mulf %34, %38 : vector<16x32xf32>
    %40 = arith.truncf %39 : vector<16x32xf32> to vector<16x32xbf16>
    %41 = vector.extract_strided_slice %18 {offsets = [0, 0], sizes = [32, 16], strides = [1, 1]} : vector<32x64xbf16> to vector<32x16xbf16>
    %cst_28 = arith.constant dense<0.000000e+00> : vector<16x16xf32>
    %42 = tpu.matmul %40, %41, %cst_28 {dimension_numbers = #tpu.dot_dimension_numbers<[1], [0], [0], [1], [0, 0, 1, 1], [], []>} : vector<16x32xbf16>, vector<32x16xbf16>, vector<16x16xf32> -> vector<16x16xf32>
    %43 = arith.truncf %42 : vector<16x16xf32> to vector<16x16xbf16>
    %44 = vector.extract_strided_slice %19 {offsets = [0, 0], sizes = [16, 32], strides = [1, 1]} : vector<64x32xbf16> to vector<16x32xbf16>
    %cst_29 = arith.constant dense<0.000000e+00> : vector<16x32xf32>
    %45 = tpu.matmul %43, %44, %cst_29 {dimension_numbers = #tpu.dot_dimension_numbers<[1], [0], [0], [1], [0, 0, 1, 1], [], []>} : vector<16x16xbf16>, vector<16x32xbf16>, vector<16x32xf32> -> vector<16x32xf32>
    %46 = arith.addf %20, %45 : vector<16x32xf32>
    %47 = vector.extract_strided_slice %16 {offsets = [0, 16], sizes = [16, 16], strides = [1, 1]} : vector<16x64xbf16> to vector<16x16xbf16>
    %48 = vector.extract_strided_slice %17 {offsets = [0, 16], sizes = [32, 16], strides = [1, 1]} : vector<32x64xbf16> to vector<32x16xbf16>
    %cst_30 = arith.constant dense<0.000000e+00> : vector<16x32xf32>
    %49 = tpu.matmul %47, %48, %cst_30 {dimension_numbers = #tpu.dot_dimension_numbers<[1], [1], [0], [0], [0, 0, 1, 0], [], []>} : vector<16x16xbf16>, vector<32x16xbf16>, vector<16x32xf32> -> vector<16x32xf32>
    %50 = vector.shape_cast %5 : vector<1x1x32xf32> to vector<1x32xf32>
    %51 = vector.broadcast %50 : vector<1x32xf32> to vector<16x32xf32>
    %52 = arith.addf %49, %51 : vector<16x32xf32>
    %53 = vector.extract_strided_slice %7 {offsets = [1, 0, 0], sizes = [1, 16, 32], strides = [1, 1, 1]} : vector<4x16x32xf32> to vector<1x16x32xf32>
    %54 = vector.shape_cast %53 : vector<1x16x32xf32> to vector<16x32xf32>
    %55 = arith.addf %52, %54 : vector<16x32xf32>
    %cst_31 = arith.constant dense<0xFF800000> : vector<16xf32>
    %56 = vector.multi_reduction <maximumf>, %55, %cst_31 [1] : vector<16x32xf32> to vector<16xf32>
    %57 = vector.shape_cast %56 : vector<16xf32> to vector<16x1xf32>
    %58 = vector.broadcast %57 : vector<16x1xf32> to vector<16x32xf32>
    %59 = arith.subf %55, %58 : vector<16x32xf32>
    %60 = math.exp %59 : vector<16x32xf32>
    %cst_32 = arith.constant dense<0.000000e+00> : vector<16xf32>
    %61 = vector.multi_reduction <add>, %60, %cst_32 [1] : vector<16x32xf32> to vector<16xf32>
    %62 = vector.shape_cast %61 : vector<16xf32> to vector<16x1xf32>
    %63 = tpu.reciprocal %62 {approx = true} : vector<16x1xf32> -> vector<16x1xf32>
    %64 = vector.broadcast %63 : vector<16x1xf32> to vector<16x32xf32>
    %65 = arith.mulf %60, %64 : vector<16x32xf32>
    %66 = arith.truncf %65 : vector<16x32xf32> to vector<16x32xbf16>
    %67 = vector.extract_strided_slice %18 {offsets = [0, 16], sizes = [32, 16], strides = [1, 1]} : vector<32x64xbf16> to vector<32x16xbf16>
    %cst_33 = arith.constant dense<0.000000e+00> : vector<16x16xf32>
    %68 = tpu.matmul %66, %67, %cst_33 {dimension_numbers = #tpu.dot_dimension_numbers<[1], [0], [0], [1], [0, 0, 1, 1], [], []>} : vector<16x32xbf16>, vector<32x16xbf16>, vector<16x16xf32> -> vector<16x16xf32>
    %69 = arith.truncf %68 : vector<16x16xf32> to vector<16x16xbf16>
    %70 = vector.extract_strided_slice %19 {offsets = [16, 0], sizes = [16, 32], strides = [1, 1]} : vector<64x32xbf16> to vector<16x32xbf16>
    %cst_34 = arith.constant dense<0.000000e+00> : vector<16x32xf32>
    %71 = tpu.matmul %69, %70, %cst_34 {dimension_numbers = #tpu.dot_dimension_numbers<[1], [0], [0], [1], [0, 0, 1, 1], [], []>} : vector<16x16xbf16>, vector<16x32xbf16>, vector<16x32xf32> -> vector<16x32xf32>
    %72 = arith.addf %46, %71 : vector<16x32xf32>
    %73 = vector.extract_strided_slice %16 {offsets = [0, 32], sizes = [16, 16], strides = [1, 1]} : vector<16x64xbf16> to vector<16x16xbf16>
    %74 = vector.extract_strided_slice %17 {offsets = [0, 32], sizes = [32, 16], strides = [1, 1]} : vector<32x64xbf16> to vector<32x16xbf16>
    %cst_35 = arith.constant dense<0.000000e+00> : vector<16x32xf32>
    %75 = tpu.matmul %73, %74, %cst_35 {dimension_numbers = #tpu.dot_dimension_numbers<[1], [1], [0], [0], [0, 0, 1, 0], [], []>} : vector<16x16xbf16>, vector<32x16xbf16>, vector<16x32xf32> -> vector<16x32xf32>
    %76 = vector.shape_cast %5 : vector<1x1x32xf32> to vector<1x32xf32>
    %77 = vector.broadcast %76 : vector<1x32xf32> to vector<16x32xf32>
    %78 = arith.addf %75, %77 : vector<16x32xf32>
    %79 = vector.extract_strided_slice %7 {offsets = [2, 0, 0], sizes = [1, 16, 32], strides = [1, 1, 1]} : vector<4x16x32xf32> to vector<1x16x32xf32>
    %80 = vector.shape_cast %79 : vector<1x16x32xf32> to vector<16x32xf32>
    %81 = arith.addf %78, %80 : vector<16x32xf32>
    %cst_36 = arith.constant dense<0xFF800000> : vector<16xf32>
    %82 = vector.multi_reduction <maximumf>, %81, %cst_36 [1] : vector<16x32xf32> to vector<16xf32>
    %83 = vector.shape_cast %82 : vector<16xf32> to vector<16x1xf32>
    %84 = vector.broadcast %83 : vector<16x1xf32> to vector<16x32xf32>
    %85 = arith.subf %81, %84 : vector<16x32xf32>
    %86 = math.exp %85 : vector<16x32xf32>
    %cst_37 = arith.constant dense<0.000000e+00> : vector<16xf32>
    %87 = vector.multi_reduction <add>, %86, %cst_37 [1] : vector<16x32xf32> to vector<16xf32>
    %88 = vector.shape_cast %87 : vector<16xf32> to vector<16x1xf32>
    %89 = tpu.reciprocal %88 {approx = true} : vector<16x1xf32> -> vector<16x1xf32>
    %90 = vector.broadcast %89 : vector<16x1xf32> to vector<16x32xf32>
    %91 = arith.mulf %86, %90 : vector<16x32xf32>
    %92 = arith.truncf %91 : vector<16x32xf32> to vector<16x32xbf16>
    %93 = vector.extract_strided_slice %18 {offsets = [0, 32], sizes = [32, 16], strides = [1, 1]} : vector<32x64xbf16> to vector<32x16xbf16>
    %cst_38 = arith.constant dense<0.000000e+00> : vector<16x16xf32>
    %94 = tpu.matmul %92, %93, %cst_38 {dimension_numbers = #tpu.dot_dimension_numbers<[1], [0], [0], [1], [0, 0, 1, 1], [], []>} : vector<16x32xbf16>, vector<32x16xbf16>, vector<16x16xf32> -> vector<16x16xf32>
    %95 = arith.truncf %94 : vector<16x16xf32> to vector<16x16xbf16>
    %96 = vector.extract_strided_slice %19 {offsets = [32, 0], sizes = [16, 32], strides = [1, 1]} : vector<64x32xbf16> to vector<16x32xbf16>
    %cst_39 = arith.constant dense<0.000000e+00> : vector<16x32xf32>
    %97 = tpu.matmul %95, %96, %cst_39 {dimension_numbers = #tpu.dot_dimension_numbers<[1], [0], [0], [1], [0, 0, 1, 1], [], []>} : vector<16x16xbf16>, vector<16x32xbf16>, vector<16x32xf32> -> vector<16x32xf32>
    %98 = arith.addf %72, %97 : vector<16x32xf32>
    %99 = vector.extract_strided_slice %16 {offsets = [0, 48], sizes = [16, 16], strides = [1, 1]} : vector<16x64xbf16> to vector<16x16xbf16>
    %100 = vector.extract_strided_slice %17 {offsets = [0, 48], sizes = [32, 16], strides = [1, 1]} : vector<32x64xbf16> to vector<32x16xbf16>
    %cst_40 = arith.constant dense<0.000000e+00> : vector<16x32xf32>
    %101 = tpu.matmul %99, %100, %cst_40 {dimension_numbers = #tpu.dot_dimension_numbers<[1], [1], [0], [0], [0, 0, 1, 0], [], []>} : vector<16x16xbf16>, vector<32x16xbf16>, vector<16x32xf32> -> vector<16x32xf32>
    %102 = vector.shape_cast %5 : vector<1x1x32xf32> to vector<1x32xf32>
    %103 = vector.broadcast %102 : vector<1x32xf32> to vector<16x32xf32>
    %104 = arith.addf %101, %103 : vector<16x32xf32>
    %105 = vector.extract_strided_slice %7 {offsets = [3, 0, 0], sizes = [1, 16, 32], strides = [1, 1, 1]} : vector<4x16x32xf32> to vector<1x16x32xf32>
    %106 = vector.shape_cast %105 : vector<1x16x32xf32> to vector<16x32xf32>
    %107 = arith.addf %104, %106 : vector<16x32xf32>
    %cst_41 = arith.constant dense<0xFF800000> : vector<16xf32>
    %108 = vector.multi_reduction <maximumf>, %107, %cst_41 [1] : vector<16x32xf32> to vector<16xf32>
    %109 = vector.shape_cast %108 : vector<16xf32> to vector<16x1xf32>
    %110 = vector.broadcast %109 : vector<16x1xf32> to vector<16x32xf32>
    %111 = arith.subf %107, %110 : vector<16x32xf32>
    %112 = math.exp %111 : vector<16x32xf32>
    %cst_42 = arith.constant dense<0.000000e+00> : vector<16xf32>
    %113 = vector.multi_reduction <add>, %112, %cst_42 [1] : vector<16x32xf32> to vector<16xf32>
    %114 = vector.shape_cast %113 : vector<16xf32> to vector<16x1xf32>
    %115 = tpu.reciprocal %114 {approx = true} : vector<16x1xf32> -> vector<16x1xf32>
    %116 = vector.broadcast %115 : vector<16x1xf32> to vector<16x32xf32>
    %117 = arith.mulf %112, %116 : vector<16x32xf32>
    %118 = arith.truncf %117 : vector<16x32xf32> to vector<16x32xbf16>
    %119 = vector.extract_strided_slice %18 {offsets = [0, 48], sizes = [32, 16], strides = [1, 1]} : vector<32x64xbf16> to vector<32x16xbf16>
    %cst_43 = arith.constant dense<0.000000e+00> : vector<16x16xf32>
    %120 = tpu.matmul %118, %119, %cst_43 {dimension_numbers = #tpu.dot_dimension_numbers<[1], [0], [0], [1], [0, 0, 1, 1], [], []>} : vector<16x32xbf16>, vector<32x16xbf16>, vector<16x16xf32> -> vector<16x16xf32>
    %121 = arith.truncf %120 : vector<16x16xf32> to vector<16x16xbf16>
    %122 = vector.extract_strided_slice %19 {offsets = [48, 0], sizes = [16, 32], strides = [1, 1]} : vector<64x32xbf16> to vector<16x32xbf16>
    %cst_44 = arith.constant dense<0.000000e+00> : vector<16x32xf32>
    %123 = tpu.matmul %121, %122, %cst_44 {dimension_numbers = #tpu.dot_dimension_numbers<[1], [0], [0], [1], [0, 0, 1, 1], [], []>} : vector<16x16xbf16>, vector<16x32xbf16>, vector<16x32xf32> -> vector<16x32xf32>
    %124 = arith.addf %98, %123 : vector<16x32xf32>
    %c0_45 = arith.constant 0 : index
    %c0_46 = arith.constant 0 : index
    %125 = vector.load %arg10[%c0_45, %c0_46] : memref<1x32xf32, #tpu.memory_space<vmem>>, vector<1x32xf32>
    %126 = vector.broadcast %125 : vector<1x32xf32> to vector<16x32xf32>
    %127 = arith.addf %124, %126 : vector<16x32xf32>
    %c0_47 = arith.constant 0 : index
    %c0_48 = arith.constant 0 : index
    %c0_49 = arith.constant 0 : index
    %128 = vector.load %arg11[%c0_47, %c0_48, %c0_49] : memref<1x16x32xf32, #tpu.memory_space<vmem>>, vector<1x16x32xf32>
    %129 = vector.shape_cast %128 : vector<1x16x32xf32> to vector<16x32xf32>
    %130 = vector.shape_cast %127 : vector<16x32xf32> to vector<1x16x32xf32>
    tpu.vector_store %arg11[%c0_47, %c0_48, %c0_49], %130 {strides = array<i32>} : memref<1x16x32xf32, #tpu.memory_space<vmem>>, vector<1x16x32xf32>,
    return
  }
  func.func @transform_0(%arg0: i32, %arg1: i32) -> (i32, i32, i32) {
    %c0_i32 = arith.constant 0 : i32
    %c0_i32_0 = arith.constant 0 : i32
    return %arg0, %arg1, %c0_i32 : i32, i32, i32
  }
  func.func @transform_1(%arg0: i32, %arg1: i32) -> (i32, i32, i32) {
    %c0_i32 = arith.constant 0 : i32
    %c0_i32_0 = arith.constant 0 : i32
    %c0_i32_1 = arith.constant 0 : i32
    return %arg0, %c0_i32, %c0_i32_0 : i32, i32, i32
  }
  func.func @transform_2(%arg0: i32, %arg1: i32) -> (i32, i32, i32, i32) {
    %c0_i32 = arith.constant 0 : i32
    %c0_i32_0 = arith.constant 0 : i32
    %c0_i32_1 = arith.constant 0 : i32
    %c0_i32_2 = arith.constant 0 : i32
    return %arg0, %c0_i32, %c0_i32_0, %c0_i32_1 : i32, i32, i32, i32
  }
  func.func @transform_3(%arg0: i32, %arg1: i32) -> (i32, i32, i32, i32) {
    %c0_i32 = arith.constant 0 : i32
    %c0_i32_0 = arith.constant 0 : i32
    %c0_i32_1 = arith.constant 0 : i32
    return %arg0, %c0_i32, %arg1, %c0_i32_0 : i32, i32, i32, i32
  }
  func.func @transform_4(%arg0: i32, %arg1: i32) -> (i32, i32) {
    %c0_i32 = arith.constant 0 : i32
    %c0_i32_0 = arith.constant 0 : i32
    %c0_i32_1 = arith.constant 0 : i32
    return %c0_i32, %c0_i32_0 : i32, i32
  }
  func.func @transform_5(%arg0: i32, %arg1: i32) -> (i32, i32) {
    %c0_i32 = arith.constant 0 : i32
    %c0_i32_0 = arith.constant 0 : i32
    %c0_i32_1 = arith.constant 0 : i32
    return %c0_i32, %c0_i32_0 : i32, i32
  }
  func.func @transform_6(%arg0: i32, %arg1: i32) -> (i32, i32) {
    %c0_i32 = arith.constant 0 : i32
    %c0_i32_0 = arith.constant 0 : i32
    %c0_i32_1 = arith.constant 0 : i32
    return %c0_i32, %c0_i32_0 : i32, i32
  }
  func.func @transform_7(%arg0: i32, %arg1: i32) -> (i32, i32) {
    %c0_i32 = arith.constant 0 : i32
    %c0_i32_0 = arith.constant 0 : i32
    %c0_i32_1 = arith.constant 0 : i32
    return %c0_i32, %c0_i32_0 : i32, i32
  }
  func.func @transform_8(%arg0: i32, %arg1: i32) -> (i32, i32) {
    %c0_i32 = arith.constant 0 : i32
    %c0_i32_0 = arith.constant 0 : i32
    %c0_i32_1 = arith.constant 0 : i32
    return %c0_i32, %c0_i32_0 : i32, i32
  }
  func.func @transform_9(%arg0: i32, %arg1: i32) -> (i32, i32, i32) {
    %c0_i32 = arith.constant 0 : i32
    %c0_i32_0 = arith.constant 0 : i32
    return %arg0, %arg1, %c0_i32 : i32, i32, i32
  }
}

</mosaic_0001>

<bundles_post_ra>
// kernel: tpu_custom_call.1
= control target key start
LH: loop header
LB: loop body
LE: loop exit
PB: predicated region body
PF: predicated region fallthrough
CT: control target
= control target key end

     0   :  { %14 = vsyncpa [#allocation3], 0  ;;  %s1843_s0 = inlined_call_operand.vmem [shape: bf16[2,16,32], index: 0, kind: input, shape index: {}]   ;;  %s1844_s1 = inlined_call_operand.vmem [shape: bf16[2,32,24], index: 1, kind: input, shape index: {}]   ;;  %s1845_s2 = inlined_call_operand.vmem [shape: f32[2,1,1,32], index: 2, kind: input, shape index: {}]   ;;  %s1846_s3 = inlined_call_operand.hbm [shape: f32[2,4,16,32], index: 3, kind: input, shape index: {}]   ;;  %s1847_s4 = inlined_call_operand.vmem [shape: bf16[32,64], index: 4, kind: input, shape index: {}]   ;;  %s1848_s5 = inlined_call_operand.vmem [shape: bf16[24,64], index: 5, kind: input, shape index: {}]   ;;  %s1849_s6 = inlined_call_operand.vmem [shape: bf16[24,64], index: 6, kind: input, shape index: {}]   ;;  %s1850_s7 = inlined_call_operand.vmem [shape: bf16[64,32], index: 7, kind: input, shape index: {}]   ;;  %s1851_s8 = inlined_call_operand.vmem [shape: f32[1,32], index: 8, kind: input, shape index: {}]   ;;  %s1852_s9 = inlined_call_operand.hbm [shape: f32[2,16,32], index: 9, kind: output, shape index: {}]  }
   0x1   :  { %16 = vsyncpa [#allocation3 + $0x1], 0 }
   0x2   :  { %17 = vsyncpa [#allocation4], 0 }
   0x3   :  { %19 = vsyncpa [#allocation4 + $0x1], 0  ;;  %s1552_s30 = smov 0   ;;  %s1554_s10 = smov 0  }
   0x4   :  { %s1556_s11 = smov 0   ;;  %s1558_s12 = smov 0  }
   0x5   :  { %s1560_s13 = smov 0   ;;  %s1562_s14 = smov 0  }
   0x6 LB: > { %1856 = sst [smem:[#allocation8_spill]] %s1473_s30  ;;  %s1183_s15 = sadd.s32 4294967295, %s1493_s14   ;;  %s1493_s14 = sphi %s1562_s14, %s25_s14   ;;  %s1489_s13 = sphi %s1560_s13, %s1868_s13   ;;  %s1485_s12 = sphi %s1558_s12, %s1867_s12   ;;  %s1481_s11 = sphi %s1556_s11, %s1871_s11   ;;  %s1477_s10 = sphi %s1554_s10, %s1870_s10   ;;  %s1473_s30 = sphi %s1552_s30, %s1869_s30  }
   0x7   : > { %1857 = sst [smem:[#allocation9_spill]] %s1489_s13  ;;  %s1184_s16 = sadd.s32 4294967294, %s1493_s14  }
   0x8   : > { %s37_s17 = sadd.s32 1, %s1489_s13  ;;  %s126_s18 = sadd.s32 1, %s1481_s11 }
   0x9   : > { %p39_p0 = scmp.ge.s32.totalorder %s37_s17, 2  ;;  %p133_p1 = scmp.ne.s32.totalorder %s1481_s11, %s1477_s10 }
   0xa   : > { %p134_p2 = scmp.eq.s32.totalorder %s1493_s14, 0  ;;  %p139_p3 = scmp.ne.s32.totalorder %s1477_s10, %s1473_s30 }
   0xb   : > { %s1873_s17 = smov (%p39_p0, %s37_s17), 0  ;;  %p140_p5 = scmp.eq.s32.totalorder %s1183_s15, 0 }
   0xc   : > { %1858 = sst [smem:[#allocation10_spill]] %s1873_s17  ;;  %p1593_p4 = por %p134_p2, %p133_p1 }
   0xd   : > { %s121_s20 = ssub.s32 %s1489_s13, %s1873_s17  ;;  %p270_p6 = scmp.eq.s32.totalorder %s1183_s15, 1 }
   0xe   : > { %p124_p7 = scmp.eq.s32.totalorder %s121_s20, 0  ;;  %p1599_p8 = por %p140_p5, %p139_p3 }
   0xf   : > { %p1603_p9 = por %p270_p6, %p133_p1  ;;  %p276_p10 = scmp.eq.s32.totalorder %s1184_s16, 1 }
  0x10   : > { %s1608_s23 = scalar_select %p124_p7, %s1481_s11, %s126_s18  }
  0x11   : > { %p1610_p11 = por %p276_p10, %p139_p3  ;;  %p1186_p12 = scmp.ge.s32.totalorder %s1493_s14, 2 }
  0x12   : > { %1862 = sst [smem:[#allocation11_spill]] %s1608_s23  ;;  %p1290_p13 = scmp.lt.s32.totalorder %s1493_s14, 2 }
  0x13   : > { %s338_s25 = sand.u32 1, %s1481_s11   ;;  %s1263_s27 = sshll.u32 %s1489_s13, 6 }
  0x14   : > { %s1187_s26 = sshll.u32 %s338_s25, 6  ;;  %s349_s15 = scalar_lea.hbm %s1846_s3, %s1263_s27 }
  0x15   : > { %s342_s20 = scalar_lea.vmem [#allocation2], %s1187_s26  ;;  %s350_s30 = sshll.u32 %s349_s15, 4  ;;  %s351_s30 = int_to_ptr.hbm [resolvable:$true] %s350_s30 }
  0x16   : > { %s352_s17 = sshll.u32 %s342_s20, 4  ;;  %p1283_p0 = pnand %p1290_p13, %p1593_p4  ;;  %s353_s17 = int_to_ptr.vmem [resolvable:$true] %s352_s17 }
  0x17   : > { %p1190_p1 = scmp.ge.s32.totalorder %s1493_s14, 1  ;;  %s339_s16 = scalar_lea.sflag [#allocation3], %s338_s25 }
  0x18   : > { %s1495_s18 = smov 128   ;;  %s1496_s23 = smov 8  }
  0x19   : > { %1285 = dma.hbm_to_vmem [thread:$0]  (!%p1283_p0), %s351_s30, 1024, %s353_s17, %s339_s16, %s1495_s18, %s1495_s18, %s1496_s23  }
  0x1a   : > { %p360_p2 = scmp.lt.s32.totalorder %s1493_s14, 3 }
  0x1c   : > { %p361_p3 = pnand %p1190_p1, %p360_p2 }
  0x1d   : > { %s1626_s13 = sand.u32 (!%p361_p3), 1, %s1477_s10  }
  0x1e   : > { %364 = sbr.rel (%p361_p3) target bundleno = 1468 (0x5bc), region = 56  ;;  %s1191_s26 = sshll.u32 (!%p361_p3), %s1626_s13, 6 }
  0x1f   : > { %s367_s27 = scalar_lea.sflag (!%p361_p3), [#allocation3], %s1626_s13  ;;  %s1630_s28 = scalar_lea.vmem (!%p361_p3), [#allocation2], %s1191_s26 }
  0x23   : > { %1464 = dma.done.wait (%p1599_p8), %s367_s27, 1024  }
  0x24   : > { %1466 = vsyncadd (%p1599_p8), %s367_s27, 4294966272  ;;  %p424_p4 = scmp.lt.s32.totalorder %s1485_s12, 1  ;;  %v502_v0 = vld [vmem:[%s1848_s5 + $0x8] sm:$0xf]  ;;  %vm529_vm0 = vcmask 1043456   ;;  %v1269_v4 = vld [vmem:[%s1847_s4] sm:$0xff] }
  0x25   : > { %v518_v1 = vunpack.c.l.b16 %v502_v0  ;;  %v1270_v2 = vld [vmem:[%s1847_s4 + $0x8] sm:$0xff]  ;;  %v1271_v6 = vld [vmem:[%s1848_s5] sm:$0xff]  ;;  %vm480_vm1 = vcmask 261120   ;;  %vm522_vm2 = vcmask 195584   ;;  %vm622_vm3 = vcmask 130048   ;;  %s1192_s26 = sshll.u32 %s1626_s13, 4 }
  0x26   : > { %s1638_s30 = scalar_select %p424_p4, %s1485_s12, 1  ;;  %490 = vmatpush.bf16.msra.mxu0 %v1270_v2  ;;  %v451_v46 = vld [vmem:[%s1630_s28] sm:$0xff]  ;;  %v452_v51 = vld [vmem:[%s1630_s28 + $0x8] sm:$0xff] }
  0x27   : > { %v520_v3 = vpack.c.b16 %v518_v1, %v518_v1  ;;  %v554_v53 = vld [vmem:[%s1849_s6 + $0x8] sm:$0xf]  ;;  %v1272_v59 = vld [vmem:[%s1849_s6] sm:$0xff]  ;;  %s422_s21 = scalar_lea.vmem [#allocation5], %s1192_s26  ;;  %s1431_s26 = scalar_lea.hbm %s1852_s9, 32 }
  0x28   : > { %s1264_s15 = sshll.u32 %s1638_s30, 3  ;;  %s1265_s16 = sshll.u32 %s1638_s30, 4  ;;  %v560_v55 = vunpack.c.l.b16 %v554_v53  ;;  %v1273_v60 = vld [vmem:[%s1850_s7] sm:$0xff] }
  0x29   : > { %s431_s19 = scalar_lea.vmem %s1843_s0, %s1264_s15  ;;  %v531_v5 = vsel %vm529_vm0, %v520_v3, 0  ;;  %s437_s29 = scalar_lea.vmem %s1844_s1, %s1265_s16 }
  0x2a   : > { %539 = vmatpush.bf16.msra.mxu1 %v531_v5  ;;  %v1266_v7 = vld [vmem:[%s431_s19] sm:$0xff]  ;;  %491 = vmatpush.bf16.msra.mxu0 %v1269_v4  ;;  %v1670_v9 = vld [vmem:[%s437_s29 + $0x8] sm:$0xff]  ;;  %s1498_s15 = smov 96   ;;  %s1499_s16 = smov 80   ;;  %v562_v57 = vpack.c.b16 %v560_v55, %v560_v55 }
  0x2b   : > { %v1665_v8 = vld [vmem:[%s437_s29] sm:$0xff]  ;;  %s1497_s29 = smov 112   ;;  %s1864_s27 = scalar_lea.vmem %s1845_s2, %s1638_s30 }
  0x2c   : > { %v1696_v44 = vld [vmem:[%s1864_s27] ss:$0 sm:$0xff]  ;;  %v565_v58 = vsel %vm529_vm0, %v562_v57, 0  ;;  %s1277_s19 = sshll.u32 %s1485_s12, 4  ;;  %s1040_s12 = scalar_lea.sflag [#allocation4], %s1626_s13 }
  0x2d   : > { %1209 = vmatmul.msk.bf16.vlgmr.msra.gmra.mxu0 %vm480_vm1, %v1266_v7  ;;  %573 = vmatpush.bf16.msra.mxu2 %v565_v58  ;;  %s1053_s25 = scalar_lea.hbm %s1852_s9, %s1277_s19 }
  0x2e   : > { %540 = vmatpush.bf16.msra.mxu1 %v1271_v6  ;;  %s1056_s20 = sshll.u32 %s1053_s25, 4  ;;  %s1057_s20 = int_to_ptr.hbm [resolvable:$true] %s1056_s20 }
  0x31   : > { %1222 = vmatmul.msk.bf16.vlgmr.msra.gmra.mxu1 %vm522_vm2, %v1665_v8  ;;  %574 = vmatpush.bf16.msra.mxu2 %v1272_v59 }
  0x34   : > { %1228 = vmatmul.msk.bf16.vlgmr.msra.gmra.mxu2 %vm522_vm2, %v1665_v8 }
  0x35   : > { %818 = vmatpush.bf16.msrb.mxu2 %v1273_v60 }
  0x41   : > { %1223 = vmatmul.msk.bf16.gmra.mxu1 %vm522_vm2, %v1670_v9 }
  0x44   : > { %1229 = vmatmul.msk.bf16.gmra.mxu2 %vm522_vm2, %v1670_v9 }
  0xaa   : > { %v493_v13 = vpop.f32.mrf.mxu0 }
  0xab   : > { %v498_v26 = vmul.f32 0.25, %v493_v13 }
  0xad   : > { %v586_v29 = vpack.c.bf16 %v498_v26, %v498_v26 }
  0xae   : > { %v542_v10 = vpop.f32.mrf.mxu1 }
  0xaf   : > { %v588_v20 = vpack.c.bf16 %v542_v10, %v542_v10  ;;  %v609_v32 = vunpack.c.l.b16 %v586_v29 }
  0xb1   : > { %v616_v25 = vunpack.c.l.b16 %v588_v20 }
  0xb2   : > { %v495_v22 = vpop.f32.mrf.mxu0 }
  0xb3   : > { %v499_v27 = vmul.f32 0.25, %v495_v22 }
  0xb5   : > { %v587_v30 = vpack.c.bf16 %v499_v27, %v499_v27 }
  0xb6   : > { %v544_v11 = vpop.f32.mrf.mxu1 }
  0xb7   : > { %v589_v17 = vpack.c.bf16 %v544_v11, %v544_v11  ;;  %v610_v33 = vunpack.c.l.b16 %v587_v30  ;;  %v576_v9 = vpop.f32.mrf.mxu2 }
  0xb9   : > { %v617_v23 = vunpack.c.l.b16 %v589_v17  ;;  %v1678_v34 = vpack.c.b16 %v610_v33, %v609_v32 }
  0xbb   : > { %v620_v28 = vpack.c.b16 %v617_v23, %v616_v25 }
  0xbd   : > { %v627_v31 = vsel %vm622_vm3, %v620_v28, 0 }
  0xbe   : > { %v547_v12 = vpop.f32.mrf.mxu1 }
  0xbf   : > { %v590_v14 = vpack.c.bf16 %v547_v12, %v547_v12  ;;  %v578_v11 = vpop.f32.mrf.mxu2 }
  0xc1   : > { %v618_v18 = vunpack.c.l.b16 %v590_v14  ;;  %v592_v14 = vpack.c.bf16 %v576_v9, %v576_v9 }
  0xc6   : > { %v549_v15 = vpop.f32.mrf.mxu1 }
  0xc7   : > { %v591_v16 = vpack.c.bf16 %v549_v15, %v549_v15  ;;  %v581_v12 = vpop.f32.mrf.mxu2  ;;  %v593_v15 = vpack.c.bf16 %v578_v11, %v578_v11 }
  0xc8   : > { %v594_v13 = vpack.c.bf16 %v581_v12, %v581_v12 }
  0xc9   : > { %v619_v19 = vunpack.c.l.b16 %v591_v16  ;;  %v676_v20 = vunpack.c.l.b16 %v593_v15  ;;  %v458_v15 = vld [vmem:[%s1630_s28 + $0x38] sm:$0xff] }
  0xca   : > { %v677_v17 = vunpack.c.l.b16 %v594_v13 }
  0xcb   : > { %v621_v21 = vpack.c.b16 %v619_v19, %v618_v18  ;;  %v675_v19 = vunpack.c.l.b16 %v592_v14 }
  0xcd   : > { %705 = vrot.lane.b32.xlu2 %v621_v21, %s1497_s29  ;;  %v630_v24 = vsel %vm622_vm3, %v621_v21, 0  ;;  %v1729_v23 = vpack.c.b16 %v676_v20, %v675_v19 }
  0xce   : > { %638 = vmatpush.bf16.xpose.msra.mxu3 %v630_v24 }
  0xcf   : > { %v583_v16 = vpop.f32.mrf.mxu2 }
  0xd0   : > { %v595_v18 = vpack.c.bf16 %v583_v16, %v583_v16 }
  0xd5   : > { %703 = vrot.lane.b32.xlu2 %v620_v28, %s1497_s29 }
  0xd6   : > { %639 = vmatpush.bf16.xpose.msra.mxu3 %v627_v31 }
  0xdd   : > { %829 = vrot.lane.b32.xlu2 %v621_v21, %s1498_s15  ;;  %1230 = vmatmul.msk.bf16.vlgmr.msra.gmra.mxu3 %vm622_vm3, %v1678_v34 }
  0xe5   : > { %930 = vrot.lane.b32.xlu2 %v620_v28, %s1499_s16 }
  0xed   : > { %827 = vrot.lane.b32.xlu2 %v620_v28, %s1498_s15 }
  0xf5   : > { %825 = vrot.lane.b32.xlu2 %v1678_v34, %s1498_s15 }
 0x127   : > { %v706_v35 = vpop.permute.xlu2 %705 }
 0x128   : > { %v714_v36 = vsel %vm622_vm3, %v706_v35, 0 }
 0x129   : > { %722 = vmatpush.bf16.xpose.msrb.mxu3 %v714_v36 }
 0x12f   : > { %v704_v37 = vpop.permute.xlu2 %703 }
 0x130   : > { %v711_v38 = vsel %vm622_vm3, %v704_v37, 0  ;;  %v453_v37 = vld [vmem:[%s1630_s28 + $0x10] sm:$0xff] }
 0x131   : > { %723 = vmatpush.bf16.xpose.msrb.mxu3 %v711_v38 }
 0x137   : > { %v830_v39 = vpop.permute.xlu2 %829 }
 0x138   : > { %v838_v40 = vsel %vm622_vm3, %v830_v39, 0 }
 0x139   : > { %846 = vmatpush.bf16.xpose.msra.mxu3 %v838_v40 }
 0x13f   : > { %v931_v41 = vpop.permute.xlu2 %930 }
 0x140   : > { %v938_v10 = vsel %vm622_vm3, %v931_v41, 0 }
 0x147   : > { %v828_v42 = vpop.permute.xlu2 %827 }
 0x148   : > { %v835_v43 = vsel %vm622_vm3, %v828_v42, 0 }
 0x149   : > { %847 = vmatpush.bf16.xpose.msra.mxu3 %v835_v43  ;;  %v454_v43 = vld [vmem:[%s1630_s28 + $0x18] sm:$0xff] }
 0x14f   : > { %v826_v32 = vpop.permute.xlu2 %825 }
 0x160   : > { %v641_v45 = vpop.f32.mrf.mxu3 }
 0x161   : > { %v642_v47 = vadd.f32 %v1696_v44, %v641_v45 }
 0x163   : > { %v646_v48 = vadd.f32 %v642_v47, %v451_v46 }
 0x165   : > { %v648_v49 = vsel %vm480_vm1, %v646_v48, -inf }
 0x166   : > { %649 = vmax.xlane.f32.xlu0 %v648_v49  ;;  %v455_v49 = vld [vmem:[%s1630_s28 + $0x20] sm:$0xff] }
 0x168   : > { %v643_v50 = vpop.f32.mrf.mxu3 }
 0x169   : > { %v644_v52 = vadd.f32 %v1696_v44, %v643_v50 }
 0x16b   : > { %v647_v54 = vadd.f32 %v644_v52, %v452_v51 }
 0x16d   : > { %v651_v56 = vsel %vm480_vm1, %v647_v54, -inf }
 0x16e   : > { %652 = vmax.xlane.f32.xlu0 %v651_v56 }
 0x182   : > { %932 = vrot.lane.b32.xlu0 %v621_v21, %s1499_s16  ;;  %v678_v21 = vunpack.c.l.b16 %v595_v18 }
 0x184   : > { %v1727_v22 = vpack.c.b16 %v678_v21, %v677_v17 }
 0x186   : > { %692 = vmatpush.bf16.msrb.mxu0 %v1727_v22 }
 0x18a   : > { %928 = vrot.lane.b32.xlu0 %v1678_v34, %s1499_s16  ;;  %693 = vmatpush.bf16.msrb.mxu0 %v1729_v23 }
 0x1d9   : > { %v650_v61 = vpop.xlane.xlu0 %649 }
 0x1da   : > { %v654_v62 = vsub.f32 %v646_v48, %v650_v61 }
 0x1dc   : > { %v656_v63 = vmul.f32 1.442695, %v654_v62 }
 0x1de   : > { %1349 = vpow2.f32 %v656_v63 }
 0x1e1   : > { %v653_v0 = vpop.xlane.xlu0 %652 }
 0x1e2   : > { %v655_v1 = vsub.f32 %v647_v54, %v653_v0  ;;  %v456_v54 = vld [vmem:[%s1630_s28 + $0x28] sm:$0xff] }
 0x1e4   : > { %v1350_v2 = vpop.eup %1349  ;;  %v658_v3 = vmul.f32 1.442695, %v655_v1 }
 0x1e5   : > { %v660_v4 = vsel %vm480_vm1, %v1350_v2, 0.0 }
 0x1e6   : > { %1351 = vpow2.f32 %v658_v3  ;;  %661 = vadd.xlane.f32.xlu1 %v660_v4 }
 0x1ec   : > { %v1352_v5 = vpop.eup %1351 }
 0x1ed   : > { %v663_v6 = vsel %vm480_vm1, %v1352_v5, 0.0 }
 0x1ee   : > { %664 = vadd.xlane.f32.xlu1 %v663_v6 }
 0x1f4   : > { %v933_v7 = vpop.permute.xlu0 %932 }
 0x1f5   : > { %v941_v8 = vsel %vm622_vm3, %v933_v7, 0  ;;  %v457_v7 = vld [vmem:[%s1630_s28 + $0x30] sm:$0xff]  ;;  %s1054_s28 = sshll.u32 %s422_s21, 4  ;;  %s1055_s28 = int_to_ptr.vmem [resolvable:$true] %s1054_s28 }
 0x1f6   : > { %949 = vmatpush.bf16.xpose.msra.mxu2 %v941_v8 }
 0x1fc   : > { %v929_v41 = vpop.permute.xlu0 %928 }
 0x1fe   : > { %950 = vmatpush.bf16.xpose.msra.mxu2 %v938_v10 }
 0x207   : > { %701 = vrot.lane.b32.xlu1 %v1678_v34, %s1497_s29 }
 0x259   : > { %v662_v24 = vpop.xlane.xlu1 %661 }
 0x25a   : > { %1353 = vrcp.f32 %v662_v24 }
 0x260   : > { %v1354_v26 = vpop.eup %1353 }
 0x261   : > { %v665_v25 = vpop.xlane.xlu1 %664  ;;  %v668_v28 = vmul.f32 %v1354_v26, %v1350_v2 }
 0x262   : > { %1355 = vrcp.f32 %v665_v25 }
 0x268   : > { %v1356_v27 = vpop.eup %1355 }
 0x269   : > { %v669_v29 = vmul.f32 %v1356_v27, %v1352_v5 }
 0x26b   : > { %v670_v30 = vpack.c.bf16 %v669_v29, %v668_v28 }
 0x26d   : > { %1231 = vmatmul.msk.bf16.vlgmr.msrb.gmra.mxu0 %vm480_vm1, %v670_v30 }
 0x279   : > { %v702_v31 = vpop.permute.xlu1 %701 }
 0x27a   : > { %1232 = vmatmul.msk.bf16.vlgmr.msrb.gmra.mxu3 %vm622_vm3, %v702_v31 }
 0x28a   : > { %1244 = vmatmul.msk.bf16.vlgmr.msra.gmra.mxu3 %vm622_vm3, %v826_v32 }
 0x2ea   : > { %v695_v33 = vpop.f32.mrf.mxu0 }
 0x2f2   : > { %v697_v34 = vpop.f32.mrf.mxu0 }
 0x2f3   : > { %v700_v35 = vpack.c.bf16 %v697_v34, %v695_v33 }
 0x2f5   : > { %1243 = vmatmul.msk.bf16.vlgmr.msrb.gmra.mxu2 %vm622_vm3, %v700_v35 }
 0x2fd   : > { %v725_v36 = vpop.f32.mrf.mxu3 }
 0x2fe   : > { %v726_v38 = vadd.f32 %v1696_v44, %v725_v36 }
 0x300   : > { %v730_v39 = vadd.f32 %v726_v38, %v453_v37 }
 0x302   : > { %v732_v40 = vsel %vm480_vm1, %v730_v39, -inf }
 0x303   : > { %733 = vmax.xlane.f32.xlu1 %v732_v40 }
 0x305   : > { %v727_v42 = vpop.f32.mrf.mxu3  ;;  %1251 = vmatmul.msk.bf16.vlgmr.msra.gmra.mxu2 %vm622_vm3, %v929_v41 }
 0x306   : > { %v728_v45 = vadd.f32 %v1696_v44, %v727_v42 }
 0x308   : > { %v731_v46 = vadd.f32 %v728_v45, %v454_v43 }
 0x30a   : > { %v735_v47 = vsel %vm480_vm1, %v731_v46, -inf }
 0x30b   : > { %736 = vmax.xlane.f32.xlu0 %v735_v47 }
 0x30d   : > { %v849_v48 = vpop.f32.mrf.mxu3 }
 0x30e   : > { %v850_v50 = vadd.f32 %v1696_v44, %v849_v48 }
 0x310   : > { %v854_v51 = vadd.f32 %v850_v50, %v455_v49  ;;  %v1274_v50 = vld [vmem:[%s1850_s7 + $0x8] sm:$0xff] }
 0x311   : > { %795 = vmatpush.bf16.msrb.mxu1 %v1274_v50 }
 0x312   : > { %v856_v52 = vsel %vm480_vm1, %v854_v51, -inf }
 0x313   : > { %857 = vmax.xlane.f32.xlu0 %v856_v52 }
 0x315   : > { %v851_v53 = vpop.f32.mrf.mxu3 }
 0x316   : > { %v852_v55 = vadd.f32 %v1696_v44, %v851_v53 }
 0x318   : > { %v855_v56 = vadd.f32 %v852_v55, %v456_v54 }
 0x31a   : > { %v859_v57 = vsel %vm480_vm1, %v855_v56, -inf }
 0x31b   : > { %860 = vmax.xlane.f32.xlu2 %v859_v57 }
 0x376   : > { %v734_v58 = vpop.xlane.xlu1 %733 }
 0x377   : > { %v738_v59 = vsub.f32 %v730_v39, %v734_v58 }
 0x378   : > { %v1750_v60 = vpop.f32.mrf.mxu2 }
 0x379   : > { %v740_v61 = vmul.f32 1.442695, %v738_v59 }
 0x37b   : > { %1357 = vpow2.f32 %v740_v61 }
 0x37e   : > { %v737_v62 = vpop.xlane.xlu0 %736 }
 0x37f   : > { %v739_v63 = vsub.f32 %v731_v46, %v737_v62 }
 0x380   : > { %v1752_v0 = vpop.f32.mrf.mxu2 }
 0x381   : > { %v1358_v1 = vpop.eup %1357  ;;  %v742_v2 = vmul.f32 1.442695, %v739_v63 }
 0x382   : > { %v744_v3 = vsel %vm480_vm1, %v1358_v1, 0.0 }
 0x383   : > { %1359 = vpow2.f32 %v742_v2  ;;  %745 = vadd.xlane.f32.xlu1 %v744_v3 }
 0x386   : > { %v858_v4 = vpop.xlane.xlu0 %857 }
 0x387   : > { %v862_v5 = vsub.f32 %v854_v51, %v858_v4 }
 0x388   : > { %v952_v6 = vpop.f32.mrf.mxu2 }
 0x389   : > { %v1360_v8 = vpop.eup %1359  ;;  %v864_v9 = vmul.f32 1.442695, %v862_v5  ;;  %v953_v10 = vadd.f32 %v1696_v44, %v952_v6  ;;  %v1276_v5 = vld [vmem:[%s1850_s7 + $0x18] sm:$0xff]  ;;  %v1275_v6 = vld [vmem:[%s1850_s7 + $0x10] sm:$0xff] }
 0x38a   : > { %v747_v11 = vsel %vm480_vm1, %v1360_v8, 0.0  ;;  %919 = vmatpush.bf16.msra.mxu1 %v1275_v6 }
 0x38b   : > { %1361 = vpow2.f32 %v864_v9  ;;  %748 = vadd.xlane.f32.xlu0 %v747_v11  ;;  %v957_v12 = vadd.f32 %v953_v10, %v457_v7 }
 0x38d   : > { %v959_v13 = vsel %vm480_vm1, %v957_v12, -inf }
 0x38e   : > { %960 = vmax.xlane.f32.xlu2 %v959_v13  ;;  %v861_v21 = vpop.xlane.xlu2 %860 }
 0x38f   : > { %v863_v24 = vsub.f32 %v855_v56, %v861_v21 }
 0x390   : > { %v954_v14 = vpop.f32.mrf.mxu2 }
 0x391   : > { %v1760_v16 = vpop.eup %1361  ;;  %v955_v17 = vadd.f32 %v1696_v44, %v954_v14  ;;  %v866_v44 = vmul.f32 1.442695, %v863_v24 }
 0x392   : > { %v868_v18 = vsel %vm480_vm1, %v1760_v16, 0.0 }
 0x393   : > { %869 = vadd.xlane.f32.xlu0 %v868_v18  ;;  %v958_v19 = vadd.f32 %v955_v17, %v458_v15  ;;  %1363 = vpow2.f32 %v866_v44 }
 0x395   : > { %v962_v20 = vsel %vm480_vm1, %v958_v19, -inf }
 0x396   : > { %963 = vmax.xlane.f32.xlu1 %v962_v20 }
 0x399   : > { %v1364_v25 = vpop.eup %1363 }
 0x39a   : > { %v871_v26 = vsel %vm480_vm1, %v1364_v25, 0.0 }
 0x3a6   : > { %757 = vrot.lane.b32.xlu2 %v1727_v22, %s1497_s29 }
 0x3af   : > { %755 = vrot.lane.b32.xlu1 %v1729_v23, %s1497_s29  ;;  %s1425_s29 = sshra.s32 %s1057_s20, 4  ;;  %s1426_s29 = int_to_ptr.hbm [resolvable:$true] %s1425_s29 }
 0x3b0   : > { %p1432_p8 = scmp.lt.s32.totalorder %s1426_s29, %s1852_s9 }
 0x3b7   : > { %984 = vrot.lane.b32.xlu1 %v1727_v22, %s1499_s16 }
 0x3bf   : > { %982 = vrot.lane.b32.xlu1 %v1729_v23, %s1499_s16 }
 0x3c7   : > { %879 = vrot.lane.b32.xlu1 %v1729_v23, %s1498_s15 }
 0x3cf   : > { %872 = vadd.xlane.f32.xlu2 %v871_v26 }
 0x3f6   : > { %v746_v27 = vpop.xlane.xlu1 %745 }
 0x3fe   : > { %v749_v23 = vpop.xlane.xlu0 %748 }
 0x401   : > { %v961_v28 = vpop.xlane.xlu2 %960 }
 0x402   : > { %v965_v29 = vsub.f32 %v957_v12, %v961_v28 }
 0x404   : > { %v967_v30 = vmul.f32 1.442695, %v965_v29 }
 0x406   : > { %1365 = vpow2.f32 %v967_v30  ;;  %v870_v48 = vpop.xlane.xlu0 %869 }
 0x409   : > { %v964_v31 = vpop.xlane.xlu1 %963  ;;  %v758_v32 = vpop.permute.xlu2 %757 }
 0x40a   : > { %v966_v33 = vsub.f32 %v958_v19, %v964_v31  ;;  %770 = vmatpush.bf16.msra.mxu0 %v758_v32  ;;  %v1348_v19 = vld [vmem:[%s1851_s8] ss:$0 sm:$0xff] }
 0x40c   : > { %v1366_v34 = vpop.eup %1365  ;;  %v969_v35 = vmul.f32 1.442695, %v966_v33 }
 0x40d   : > { %v971_v36 = vsel %vm480_vm1, %v1366_v34, 0.0 }
 0x40e   : > { %1367 = vpow2.f32 %v969_v35  ;;  %972 = vadd.xlane.f32.xlu0 %v971_v36 }
 0x40f   : > { %1369 = vrcp.f32 %v749_v23 }
 0x410   : > { %1371 = vrcp.f32 %v746_v27 }
 0x414   : > { %v1368_v37 = vpop.eup %1367 }
 0x415   : > { %v974_v38 = vsel %vm480_vm1, %v1368_v37, 0.0  ;;  %v1370_v39 = vpop.eup %1369 }
 0x416   : > { %975 = vadd.xlane.f32.xlu0 %v974_v38  ;;  %v1372_v40 = vpop.eup %1371  ;;  %v753_v41 = vmul.f32 %v1370_v39, %v1360_v8 }
 0x417   : > { %v752_v42 = vmul.f32 %v1372_v40, %v1358_v1 }
 0x419   : > { %v754_v45 = vpack.c.bf16 %v753_v41, %v752_v42 }
 0x421   : > { %v756_v43 = vpop.permute.xlu1 %755 }
 0x422   : > { %771 = vmatpush.bf16.msra.mxu0 %v756_v43 }
 0x425   : > { %1233 = vmatmul.msk.bf16.vlgmr.msra.gmra.mxu0 %vm480_vm1, %v754_v45 }
 0x429   : > { %v985_v46 = vpop.permute.xlu1 %984 }
 0x42a   : > { %997 = vmatpush.bf16.msrb.mxu3 %v985_v46  ;;  %881 = vrot.lane.b32.xlu0 %v1727_v22, %s1498_s15  ;;  %s1427_s15 = scalar_lea.hbm %s1426_s29, 16 }
 0x42b   : > { %p1428_p5 = scmp.ne.s32.totalorder %s1426_s29, %s1427_s15  ;;  %p1433_p10 = scmp.lt.s32.totalorder %s1431_s26, %s1427_s15 }
 0x42d   : > { %p1429_p6 = pnand %p1428_p5, %p1603_p9  ;;  %p1434_p13 = por %p1433_p10, %p1432_p8 }
 0x42f   : > { %p1430_p7 = pneg %p1429_p6 }
 0x431   : > { %v983_v47 = vpop.permute.xlu1 %982  ;;  %p1435_p0 = pnand %p1434_p13, %p1430_p7 }
 0x432   : > { %998 = vmatpush.bf16.msrb.mxu3 %v983_v47 }
 0x439   : > { %v880_v63 = vpop.permute.xlu1 %879 }
 0x442   : > { %v873_v56 = vpop.xlane.xlu2 %872 }
 0x481   : > { %v973_v49 = vpop.xlane.xlu0 %972 }
 0x482   : > { %1373 = vrcp.f32 %v973_v49 }
 0x488   : > { %v1374_v52 = vpop.eup %1373 }
 0x489   : > { %v976_v51 = vpop.xlane.xlu0 %975  ;;  %v979_v54 = vmul.f32 %v1374_v52, %v1366_v34 }
 0x48a   : > { %1375 = vrcp.f32 %v976_v51 }
 0x48b   : > { %1377 = vrcp.f32 %v873_v56 }
 0x48c   : > { %1379 = vrcp.f32 %v870_v48 }
 0x490   : > { %v1376_v53 = vpop.eup %1375 }
 0x491   : > { %v980_v55 = vmul.f32 %v1376_v53, %v1368_v37  ;;  %v1378_v22 = vpop.eup %1377 }
 0x492   : > { %v1380_v59 = vpop.eup %1379  ;;  %v877_v61 = vmul.f32 %v1378_v22, %v1364_v25 }
 0x493   : > { %v981_v57 = vpack.c.bf16 %v980_v55, %v979_v54  ;;  %v876_v62 = vmul.f32 %v1380_v59, %v1760_v16 }
 0x495   : > { %1252 = vmatmul.msk.bf16.vlgmr.msrb.gmra.mxu3 %vm480_vm1, %v981_v57  ;;  %v878_v1 = vpack.c.bf16 %v877_v61, %v876_v62 }
 0x49c   : > { %v882_v58 = vpop.permute.xlu0 %881 }
 0x49d   : > { %894 = vmatpush.bf16.msrb.mxu0 %v882_v58 }
 0x4a1   : > { %895 = vmatpush.bf16.msrb.mxu0 %v880_v63 }
 0x4a2   : > { %v773_v2 = vpop.f32.mrf.mxu0 }
 0x4a4   : > { %1245 = vmatmul.msk.bf16.vlgmr.msrb.gmra.mxu0 %vm480_vm1, %v878_v1 }
 0x4a5   : > { %1022 = vmatpush.bf16.msra.mxu0 %v1276_v5 }
 0x4aa   : > { %v775_v3 = vpop.f32.mrf.mxu0 }
 0x4ab   : > { %v778_v4 = vpack.c.bf16 %v775_v3, %v773_v2 }
 0x4ad   : > { %1238 = vmatmul.msk.bf16.vlgmr.msrb.gmra.mxu1 %vm622_vm3, %v778_v4 }
 0x518   : > { %v1000_v7 = vpop.f32.mrf.mxu3 }
 0x520   : > { %v1002_v8 = vpop.f32.mrf.mxu3 }
 0x521   : > { %v1005_v9 = vpack.c.bf16 %v1002_v8, %v1000_v7  ;;  %v897_v10 = vpop.f32.mrf.mxu0 }
 0x523   : > { %1257 = vmatmul.msk.bf16.vlgmr.msra.gmra.mxu0 %vm622_vm3, %v1005_v9 }
 0x529   : > { %v899_v11 = vpop.f32.mrf.mxu0 }
 0x52a   : > { %v902_v12 = vpack.c.bf16 %v899_v11, %v897_v10  ;;  %v797_v13 = vpop.f32.mrf.mxu1 }
 0x52b   : > { %v821_v15 = vadd.f32 %v1750_v60, %v797_v13 }
 0x52c   : > { %1250 = vmatmul.msk.bf16.vlgmr.msra.gmra.mxu1 %vm622_vm3, %v902_v12 }
 0x532   : > { %v799_v14 = vpop.f32.mrf.mxu1 }
 0x533   : > { %v823_v24 = vadd.f32 %v1752_v0, %v799_v14 }
 0x5a0   : > { %v1024_v16 = vpop.f32.mrf.mxu0 }
 0x5a8   : > { %v1026_v25 = vpop.f32.mrf.mxu0 }
 0x5a9   : > { %v921_v17 = vpop.f32.mrf.mxu1 }
 0x5aa   : > { %v926_v18 = vadd.f32 %v921_v17, %v821_v15 }
 0x5ac   : > { %v1029_v20 = vadd.f32 %v1024_v16, %v926_v18 }
 0x5ae   : > { %v1035_v21 = vadd.f32 %v1348_v19, %v1029_v20 }
 0x5b0   : > { %1037 = vst.msk [vmem:[%s422_s21] sm:$0xff] %vm480_vm1, %v1035_v21 }
 0x5b1   : > { %v923_v60 = vpop.f32.mrf.mxu1 }
 0x5b2   : > { %v927_v44 = vadd.f32 %v923_v60, %v823_v24 }
 0x5b4   : > { %v1030_v26 = vadd.f32 %v1026_v25, %v927_v44 }
 0x5b6   : > { %v1036_v27 = vadd.f32 %v1348_v19, %v1030_v26 }
 0x5b8   : > { %1038 = vst.msk [vmem:[%s422_s21 + $0x8] sm:$0xff] %vm480_vm1, %v1036_v27 }
 0x5b9   : > { %1438 = shalt.err (!%p1435_p0)
}
 0x5ba   : > { %s1500_s13 = smov 128   ;;  %s1501_s19 = smov 8  }
 0x5bb   : > { %1280 = dma.vmem_to_hbm [thread:$0]  (%p1603_p9), %s1055_s28, 256, %s1057_s20, %s1040_s12, %s1500_s13, %s1500_s13, %s1501_s19  }
 0x5bc PF: > { %s1865_s30 = sld [smem:[#allocation8_spill]]  ;;  %p1287_p1 = pnand %p1186_p12, %p1610_p11 }
 0x5be   : > { %p1288_p2 = pneg %p1287_p1 }
 0x5c2   : > { %s1071_s23 = sand.u32 1, %s1865_s30  }
 0x5c3   : > { %s1072_s25 = scalar_lea.sflag [#allocation4], %s1071_s23 }
 0x5c4   : > { %1468 = dma.done.wait (%p1288_p2), %s1072_s25, 256  }
 0x5c5   : > { %1470 = vsyncadd (%p1288_p2), %s1072_s25, 4294967040  ;;  %s25_s14 = sadd.s32 1, %s1493_s14   ;;  %s1866_s21 = sld [smem:[#allocation11_spill]] }
 0x5c6   : > { %p22_p3 = scmp.ge.s32.totalorder %s25_s14, 4   ;;  %s1867_s12 = sld [smem:[#allocation9_spill]] }
 0x5c7   : > { %s1868_s13 = sld [smem:[#allocation10_spill]]  ;;  %s1869_s30 = smov %s1477_s10 }
 0x5c8   : > { %s1870_s10 = smov %s1481_s11  ;;  %24 = sbr.rel (!%p22_p3) target bundleno = 6 (0x6), region = 110 }
 0x5cb   : > { %s1871_s11 = smov %s1866_s21 }
 0x5cd   :  { %1078 = vsyncpa [#allocation3], 1 }
 0x5ce   :  { %1080 = vsyncpa [#allocation3 + $0x1], 1 }
 0x5cf   :  { %1081 = vsyncpa [#allocation4], 1 }
 0x5d0   :  { %1083 = vsyncpa [#allocation4 + $0x1], 1 }

</bundles_post_ra>
